<compile_context>
chip_gen: v6e
topology: v6e:2x2x1
jax: 0.10.0
libtpu: 0.0.40
codegen_flags: <defaults>
</compile_context>

<pallas_src>
import functools
import math

import jax
import jax.numpy as jnp
from jax.experimental import pallas as pl
from jax.experimental.pallas import tpu as pltpu


# ----------------------------------------------------------------------------
# Config (small synthetic BERT)
# ----------------------------------------------------------------------------
class Config:
    vocab_size = 100
    hidden_size = 32
    num_attention_heads = 2
    intermediate_size = 64
    num_hidden_layers = 2
    max_position_embeddings = 16
    type_vocab_size = 2
    layer_norm_eps = 1e-12
    initializer_range = 0.02


CFG = Config()


# ----------------------------------------------------------------------------
# Helpers
# ----------------------------------------------------------------------------
def _batch_block(B, S, target_rows=128):
    """Largest divisor of B whose block gives ~target_rows matmul rows."""
    target = max(1, target_rows // max(S, 1))
    bb = 1
    for d in range(1, B + 1):
        if B % d == 0 and d <= target:
            bb = d
    return bb


def _layernorm(h, gamma, beta, eps):
    mu = jnp.mean(h, axis=-1, keepdims=True)
    var = jnp.mean(jnp.square(h - mu), axis=-1, keepdims=True)
    return (h - mu) * jax.lax.rsqrt(var + eps) * gamma + beta


def _gelu(x):
    # HF BERT erf-based gelu (exact parity; tanh-approx would use the EUP slot).
    return 0.5 * x * (1.0 + jax.lax.erf(x * (1.0 / math.sqrt(2.0))))


# ----------------------------------------------------------------------------
# Fused encoder-layer kernel: one batch-block per grid step
# ----------------------------------------------------------------------------
def _bert_layer_kernel(x_ref, m_ref,
                       wqkv_ref, bqkv_ref, wo_h_ref, vecs_ref,
                       wi_ref, bi_ref, wff_ref,
                       out_ref, *, num_heads, head_dim, eps, scale, b_blk, seq):
    Bb, S, hd = b_blk, seq, head_dim
    M = Bb * S
    H = num_heads * hd

    x_bf = x_ref[...]                                # (M, H) bf16
    mask = m_ref[...]                                # (Bb, 1, S) f32 additive

    vecs = vecs_ref[...]                             # (8, H) f32 packed vectors
    ao_b, a_ln_g, a_ln_b = vecs[0:1, :], vecs[1:2, :], vecs[2:3, :]
    o_b, o_ln_g, o_ln_b = vecs[3:4, :], vecs[4:5, :], vecs[5:6, :]

    # --- Multi-head self-attention ------------------------------------------
    # Heads are leading-axis indices into the weight refs (no lane slicing),
    # the context of each head is folded straight into the attention-output
    # projection accumulator (sum over heads == concat + big matmul).
    attn = jnp.zeros((M, H), jnp.float32)
    for h in range(num_heads):
        q = jnp.dot(x_bf, wqkv_ref[0, h],
                    preferred_element_type=jnp.float32) + bqkv_ref[0, h]
        k = jnp.dot(x_bf, wqkv_ref[1, h],
                    preferred_element_type=jnp.float32) + bqkv_ref[1, h]
        v = jnp.dot(x_bf, wqkv_ref[2, h],
                    preferred_element_type=jnp.float32) + bqkv_ref[2, h]
        q = q.reshape(Bb, S, hd).astype(jnp.bfloat16)
        k = k.reshape(Bb, S, hd).astype(jnp.bfloat16)
        v = v.reshape(Bb, S, hd).astype(jnp.bfloat16)

        s = jnp.einsum('bqd,bkd->bqk', q, k,
                       preferred_element_type=jnp.float32) * scale + mask
        s = s - jnp.max(s, axis=-1, keepdims=True)
        p = jnp.exp(s)
        # approx reciprocal (EUP): probs sum to ~1 within approx tolerance.
        p = p * pl.reciprocal(jnp.sum(p, axis=-1, keepdims=True), approx=True)

        ctx = jnp.einsum('bqk,bkd->bqd', p.astype(jnp.bfloat16), v,
                         preferred_element_type=jnp.float32)   # (Bb, S, hd) f32
        attn = attn + jnp.dot(ctx.reshape(M, hd).astype(jnp.bfloat16),
                              wo_h_ref[h], preferred_element_type=jnp.float32)

    # BertSelfOutput: dense(+bias) -> (dropout=id) -> LayerNorm(x + residual)
    x_f32 = x_bf.astype(jnp.float32)
    h1 = _layernorm(attn + ao_b + x_f32, a_ln_g, a_ln_b, eps)   # (M, H) f32

    # BertIntermediate: dense + gelu
    inter = jnp.dot(h1.astype(jnp.bfloat16), wi_ref[...],
                    preferred_element_type=jnp.float32) + bi_ref[...]
    inter = _gelu(inter)

    # BertOutput: dense -> (dropout=id) -> LayerNorm(x + residual)
    ffn = jnp.dot(inter.astype(jnp.bfloat16), wff_ref[...],
                  preferred_element_type=jnp.float32) + o_b
    h2 = _layernorm(ffn + h1, o_ln_g, o_ln_b, eps)

    out_ref[...] = h2.astype(out_ref.dtype)


def bert_layer(lp, cfg, hidden_states, additive_mask):
    """hidden_states: [B, S, H]; additive_mask: [B, 1, S] (HF-style -10000)."""
    B, S, H = hidden_states.shape
    nH = cfg.num_attention_heads
    hd = H // nH
    I = cfg.intermediate_size
    Bb = _batch_block(B, S)

    kernel = functools.partial(
        _bert_layer_kernel, num_heads=nH, head_dim=hd,
        eps=cfg.layer_norm_eps, scale=1.0 / math.sqrt(hd), b_blk=Bb, seq=S)

    # Advisory cost estimate so XLA can schedule around the custom call.
    flops = B * (2 * S * H * 3 * H          # qkv projections
                 + nH * (4 * S * S * hd)    # qk^T + pv
                 + 2 * S * H * H            # attn output proj
                 + 2 * S * H * I            # intermediate
                 + 2 * S * I * H)           # output proj
    transcendentals = B * (nH * S * S + S * I)
    bytes_accessed = (2 * 2 * B * S * H + 4 * B * S                 # acts + mask
                      + 2 * (3 * H * H + H * H + H * I + I * H)     # bf16 weights
                      + 4 * (3 * H + 8 * H + I))                    # f32 vectors
    cost = pl.CostEstimate(flops=int(flops),
                           transcendentals=int(transcendentals),
                           bytes_accessed=int(bytes_accessed))

    def cspec(shape):  # weight blocks: constant index across the parallel grid
        n = len(shape)
        return pl.BlockSpec(shape, lambda i, n=n: (0,) * n)

    x2 = hidden_states.reshape(B * S, H).astype(jnp.bfloat16)

    out2 = pl.pallas_call(
        kernel,
        out_shape=jax.ShapeDtypeStruct((B * S, H), jnp.bfloat16),
        grid=(B // Bb,),
        in_specs=[
            pl.BlockSpec((Bb * S, H), lambda i: (i, 0)),     # hidden (flattened)
            pl.BlockSpec((Bb, 1, S), lambda i: (i, 0, 0)),   # additive mask
            cspec((3, nH, H, hd)),                           # per-head q/k/v weights
            cspec((3, nH, 1, hd)),                           # per-head q/k/v biases
            cspec((nH, hd, H)),                              # per-head attn-out weights
            cspec((8, H)),                                   # packed bias/LN vectors
            cspec((H, I)),                                   # intermediate dense
            cspec((1, I)),                                   # intermediate bias
            cspec((I, H)),                                   # output dense
        ],
        out_specs=pl.BlockSpec((Bb * S, H), lambda i: (i, 0)),
        compiler_params=pltpu.CompilerParams(
            dimension_semantics=("parallel",),
            vmem_limit_bytes=32 * 1024 * 1024),
        cost_estimate=cost,
    )(x2, additive_mask,
      lp["wqkv"], lp["bqkv"], lp["wo_h"], lp["vecs"],
      lp["i_w"], lp["i_b"], lp["o_w"])

    return out2.reshape(B, S, H)


# ----------------------------------------------------------------------------
# Fused embedding-sum + LayerNorm kernel
# ----------------------------------------------------------------------------
def _emb_ln_kernel(we_ref, pe_ref, te_ref, g_ref, b_ref, o_ref, *, eps):
    x = (we_ref[...].astype(jnp.float32)
         + pe_ref[...].astype(jnp.float32)      # (1, S, H) broadcasts over batch
         + te_ref[...].astype(jnp.float32))
    o_ref[...] = _layernorm(x, g_ref[...], b_ref[...], eps).astype(o_ref.dtype)


def emb_layernorm(we, pe, te, gamma, beta, eps):
    B, S, H = we.shape
    Bb = _batch_block(B, S)
    return pl.pallas_call(
        functools.partial(_emb_ln_kernel, eps=eps),
        out_shape=jax.ShapeDtypeStruct((B, S, H), jnp.bfloat16),
        grid=(B // Bb,),
        in_specs=[
            pl.BlockSpec((Bb, S, H), lambda i: (i, 0, 0)),
            pl.BlockSpec((1, S, H), lambda i: (0, 0, 0)),
            pl.BlockSpec((Bb, S, H), lambda i: (i, 0, 0)),
            pl.BlockSpec((1, H), lambda i: (0, 0)),
            pl.BlockSpec((1, H), lambda i: (0, 0)),
        ],
        out_specs=pl.BlockSpec((Bb, S, H), lambda i: (i, 0, 0)),
        compiler_params=pltpu.CompilerParams(
            dimension_semantics=("parallel",)),
    )(we, pe, te, gamma.reshape(1, H), beta.reshape(1, H))


# ----------------------------------------------------------------------------
# Pooler (left to XLA per review: a grid=(1,) pallas_call here is pure overhead)
# ----------------------------------------------------------------------------
def bert_pooler(params, sequence_output):
    first = sequence_output[:, 0, :].astype(jnp.float32)        # [B, H]
    return jnp.tanh(first @ params["pooler_w"] + params["pooler_b"])


# ----------------------------------------------------------------------------
# Parameter initialization (deterministic, synthetic)
# ----------------------------------------------------------------------------
def _init_params(key, cfg):
    H, I = cfg.hidden_size, cfg.intermediate_size
    nH = cfg.num_attention_heads
    hd = H // nH
    ks = iter(jax.random.split(key, 4 + cfg.num_hidden_layers * 6))

    def nrm(shape):
        return cfg.initializer_range * jax.random.normal(next(ks), shape, jnp.float32)

    p = {
        "word_emb": nrm((cfg.vocab_size, H)).astype(jnp.bfloat16),
        "pos_emb": nrm((cfg.max_position_embeddings, H)).astype(jnp.bfloat16),
        "type_emb": nrm((cfg.type_vocab_size, H)).astype(jnp.bfloat16),
        "emb_ln_g": jnp.ones((H,), jnp.float32),
        "emb_ln_b": jnp.zeros((H,), jnp.float32),
        "pooler_w": nrm((H, H)),
        "pooler_b": jnp.zeros((H,), jnp.float32),
        "layers": [],
    }

    def to_heads(w):  # (H, H) -> (nH, H, hd)
        return jnp.transpose(w.reshape(H, nH, hd), (1, 0, 2))

    for _ in range(cfg.num_hidden_layers):
        q_w, k_w, v_w = nrm((H, H)), nrm((H, H)), nrm((H, H))
        ao_w = nrm((H, H))
        # Packed (8, H) vector table: rows = ao_b, a_ln_g, a_ln_b, o_b,
        # o_ln_g, o_ln_b, pad, pad.
        vecs = jnp.zeros((8, H), jnp.float32).at[1].set(1.0).at[4].set(1.0)
        lp = {
            "wqkv": jnp.stack([to_heads(q_w), to_heads(k_w), to_heads(v_w)],
                              axis=0).astype(jnp.bfloat16),       # (3, nH, H, hd)
            "bqkv": jnp.zeros((3, nH, 1, hd), jnp.float32),
            "wo_h": ao_w.reshape(nH, hd, H).astype(jnp.bfloat16),  # (nH, hd, H)
            "vecs": vecs,
            "i_w": nrm((H, I)).astype(jnp.bfloat16),
            "i_b": jnp.zeros((1, I), jnp.float32),
            "o_w": nrm((I, H)).astype(jnp.bfloat16),
        }
        p["layers"].append(lp)
    return p


# ----------------------------------------------------------------------------
# Model pieces (JAX glue calling the Pallas kernels)
# ----------------------------------------------------------------------------
def bert_embeddings(params, cfg, input_ids, token_type_ids):
    B, S = input_ids.shape
    we = jnp.take(params["word_emb"], input_ids, axis=0)          # [B, S, H]
    te = jnp.take(params["type_emb"], token_type_ids, axis=0)     # [B, S, H]
    pe = params["pos_emb"][:S][None]                              # [1, S, H]
    # dropout -> identity (inference)
    return emb_layernorm(we, pe, te, params["emb_ln_g"], params["emb_ln_b"],
                         cfg.layer_norm_eps)


def bert_encoder4mix(params, cfg, hidden_states, attention_mask,
                     hidden_states2=None, attention_mask2=None,
                     l=None, mix_layer=1000):
    # TODO(synk): head_mask pruning is not implemented (head_mask=None path only).
    all_hidden_states = ()
    if mix_layer == -1 and hidden_states2 is not None:
        hidden_states = l * hidden_states + (1 - l) * hidden_states2
    B = hidden_states.shape[0]
    for i, lp in enumerate(params["layers"]):
        all_hidden_states = all_hidden_states + (hidden_states,)
        if i <= mix_layer:
            if hidden_states2 is not None:
                # Run both streams in ONE fused layer call (batch concat);
                # attention is per batch row, so semantics are unchanged.
                both = jnp.concatenate([hidden_states, hidden_states2], axis=0)
                both_mask = jnp.concatenate([attention_mask, attention_mask2], axis=0)
                both = bert_layer(lp, cfg, both, both_mask)
                hidden_states, hidden_states2 = both[:B], both[B:]
            else:
                hidden_states = bert_layer(lp, cfg, hidden_states, attention_mask)
        elif i == mix_layer:
            # NOTE: unreachable in the original PyTorch code (i <= mix_layer
            # already covers i == mix_layer), so the mixup at mix_layer never
            # happens there; reproduced verbatim for parity and flagged here.
            if hidden_states2 is not None:
                hidden_states = l * hidden_states + (1 - l) * hidden_states2
        else:
            hidden_states = bert_layer(lp, cfg, hidden_states, attention_mask)
    all_hidden_states = all_hidden_states + (hidden_states,)
    return (hidden_states, all_hidden_states)


def bert_model4mix_forward(params, cfg, input_ids, attention_mask, token_type_ids,
                           input_ids2=None, attention_mask2=None,
                           token_type_ids2=None, l=None, mix_layer=1000):
    if attention_mask is None:
        if input_ids2 is not None:
            attention_mask2 = jnp.ones_like(input_ids2)
        attention_mask = jnp.ones_like(input_ids)
    if token_type_ids is None:
        token_type_ids = jnp.zeros_like(input_ids, dtype=jnp.int32)
        if input_ids2 is not None:
            token_type_ids2 = jnp.zeros_like(input_ids2, dtype=jnp.int32)

    # HF-style additive mask, [B, 1, S] (broadcasts over heads / query rows).
    ext_mask = (1.0 - attention_mask[:, None, :].astype(jnp.float32)) * -10000.0

    embedding_output = bert_embeddings(params, cfg, input_ids, token_type_ids)

    if input_ids2 is not None:
        ext_mask2 = (1.0 - attention_mask2[:, None, :].astype(jnp.float32)) * -10000.0
        embedding_output2 = bert_embeddings(params, cfg, input_ids2, token_type_ids2)
        encoder_outputs = bert_encoder4mix(params, cfg, embedding_output, ext_mask,
                                           embedding_output2, ext_mask2,
                                           l=l, mix_layer=mix_layer)
    else:
        encoder_outputs = bert_encoder4mix(params, cfg, embedding_output, ext_mask)

    sequence_output = encoder_outputs[0]
    pooled_output = bert_pooler(params, sequence_output)
    outputs = (sequence_output, pooled_output, embedding_output) + encoder_outputs[1:]
    return outputs


# ----------------------------------------------------------------------------
# Main
# ----------------------------------------------------------------------------
if __name__ == "__main__":
    key = jax.random.PRNGKey(0)
    k_param, k_ids = jax.random.split(key)

    params = _init_params(k_param, CFG)

    B, S = 2, 8
    input_ids = jax.random.randint(k_ids, (B, S), 0, CFG.vocab_size, dtype=jnp.int32)
    attention_mask = jnp.ones((B, S), dtype=jnp.int32)
    token_type_ids = jnp.zeros((B, S), dtype=jnp.int32)

    outputs = bert_model4mix_forward(params, CFG, input_ids, attention_mask,
                                     token_type_ids)
    sequence_output, pooled_output, embedding_output, all_hidden_states = outputs

    jax.block_until_ready(sequence_output)
    jax.block_until_ready(pooled_output)
    jax.block_until_ready(embedding_output)
    for h in all_hidden_states:
        jax.block_until_ready(h)

    assert sequence_output.shape == (B, S, CFG.hidden_size)
    assert pooled_output.shape == (B, CFG.hidden_size)
    assert embedding_output.shape == (B, S, CFG.hidden_size)
    assert len(all_hidden_states) == CFG.num_hidden_layers + 1
    assert bool(jnp.all(jnp.isfinite(sequence_output.astype(jnp.float32))))

    print("KERNEL_OK")
</pallas_src>

<mosaic_0001>
module attributes {stable_mosaic.version = 11 : i64} {
  func.func @_emb_ln_kernel(%arg0: i32, %arg1: memref<2x8x32xbf16, #tpu.memory_space<vmem>>, %arg2: memref<1x8x32xbf16, #tpu.memory_space<vmem>>, %arg3: memref<2x8x32xbf16, #tpu.memory_space<vmem>>, %arg4: memref<1x32xf32, #tpu.memory_space<vmem>>, %arg5: memref<1x32xf32, #tpu.memory_space<vmem>>, %arg6: memref<2x8x32xbf16, #tpu.memory_space<vmem>>) attributes {dimension_semantics = [#tpu.dimension_semantics<parallel>], iteration_bounds = array<i64: 1>, scalar_prefetch = 0 : i64, scratch_operands = 0 : i64, tpu.core_type = #tpu.core_type<tc>, window_params = [{transform_indices = @transform_0, window_bounds = array<i64: 2, 8, 32>}, {pipeline_mode = #tpu.pipeline_mode<synchronous>, transform_indices = @transform_1, window_bounds = array<i64: 1, 8, 32>}, {transform_indices = @transform_2, window_bounds = array<i64: 2, 8, 32>}, {pipeline_mode = #tpu.pipeline_mode<synchronous>, transform_indices = @transform_3, window_bounds = array<i64: 1, 32>}, {pipeline_mode = #tpu.pipeline_mode<synchronous>, transform_indices = @transform_4, window_bounds = array<i64: 1, 32>}, {transform_indices = @transform_5, window_bounds = array<i64: 2, 8, 32>}]} {
    %c0 = arith.constant 0 : index
    %c0_0 = arith.constant 0 : index
    %c0_1 = arith.constant 0 : index
    %0 = vector.load %arg1[%c0, %c0_0, %c0_1] : memref<2x8x32xbf16, #tpu.memory_space<vmem>>, vector<2x8x32xbf16>
    %1 = arith.extf %0 : vector<2x8x32xbf16> to vector<2x8x32xf32>
    %c0_2 = arith.constant 0 : index
    %c0_3 = arith.constant 0 : index
    %c0_4 = arith.constant 0 : index
    %2 = vector.load %arg2[%c0_2, %c0_3, %c0_4] : memref<1x8x32xbf16, #tpu.memory_space<vmem>>, vector<1x8x32xbf16>
    %3 = arith.extf %2 : vector<1x8x32xbf16> to vector<1x8x32xf32>
    %4 = vector.broadcast %3 : vector<1x8x32xf32> to vector<2x8x32xf32>
    %5 = arith.addf %1, %4 : vector<2x8x32xf32>
    %c0_5 = arith.constant 0 : index
    %c0_6 = arith.constant 0 : index
    %c0_7 = arith.constant 0 : index
    %6 = vector.load %arg3[%c0_5, %c0_6, %c0_7] : memref<2x8x32xbf16, #tpu.memory_space<vmem>>, vector<2x8x32xbf16>
    %7 = arith.extf %6 : vector<2x8x32xbf16> to vector<2x8x32xf32>
    %8 = arith.addf %5, %7 : vector<2x8x32xf32>
    %c0_8 = arith.constant 0 : index
    %c0_9 = arith.constant 0 : index
    %9 = vector.load %arg4[%c0_8, %c0_9] : memref<1x32xf32, #tpu.memory_space<vmem>>, vector<1x32xf32>
    %c0_10 = arith.constant 0 : index
    %c0_11 = arith.constant 0 : index
    %10 = vector.load %arg5[%c0_10, %c0_11] : memref<1x32xf32, #tpu.memory_space<vmem>>, vector<1x32xf32>
    %cst = arith.constant dense<0.000000e+00> : vector<2x8xf32>
    %11 = vector.multi_reduction <add>, %8, %cst [2] : vector<2x8x32xf32> to vector<2x8xf32>
    %12 = vector.shape_cast %11 : vector<2x8xf32> to vector<2x8x1xf32>
    %cst_12 = arith.constant 3.200000e+01 : f32
    %13 = vector.broadcast %cst_12 : f32 to vector<2x8x1xf32>
    %14 = arith.divf %12, %13 : vector<2x8x1xf32>
    %15 = vector.broadcast %14 : vector<2x8x1xf32> to vector<2x8x32xf32>
    %16 = arith.subf %8, %15 : vector<2x8x32xf32>
    %17 = arith.mulf %16, %16 : vector<2x8x32xf32>
    %cst_13 = arith.constant dense<0.000000e+00> : vector<2x8xf32>
    %18 = vector.multi_reduction <add>, %17, %cst_13 [2] : vector<2x8x32xf32> to vector<2x8xf32>
    %19 = vector.shape_cast %18 : vector<2x8xf32> to vector<2x8x1xf32>
    %cst_14 = arith.constant 3.200000e+01 : f32
    %20 = vector.broadcast %cst_14 : f32 to vector<2x8x1xf32>
    %21 = arith.divf %19, %20 : vector<2x8x1xf32>
    %22 = vector.broadcast %14 : vector<2x8x1xf32> to vector<2x8x32xf32>
    %23 = arith.subf %8, %22 : vector<2x8x32xf32>
    %cst_15 = arith.constant 9.99999996E-13 : f32
    %24 = vector.broadcast %cst_15 : f32 to vector<2x8x1xf32>
    %25 = arith.addf %21, %24 : vector<2x8x1xf32>
    %26 = math.rsqrt %25 : vector<2x8x1xf32>
    %27 = vector.broadcast %26 : vector<2x8x1xf32> to vector<2x8x32xf32>
    %28 = arith.mulf %23, %27 : vector<2x8x32xf32>
    %29 = vector.shape_cast %9 : vector<1x32xf32> to vector<1x1x32xf32>
    %30 = vector.broadcast %29 : vector<1x1x32xf32> to vector<2x8x32xf32>
    %31 = arith.mulf %28, %30 : vector<2x8x32xf32>
    %32 = vector.shape_cast %10 : vector<1x32xf32> to vector<1x1x32xf32>
    %33 = vector.broadcast %32 : vector<1x1x32xf32> to vector<2x8x32xf32>
    %34 = arith.addf %31, %33 : vector<2x8x32xf32>
    %35 = arith.truncf %34 : vector<2x8x32xf32> to vector<2x8x32xbf16>
    %c0_16 = arith.constant 0 : index
    %c0_17 = arith.constant 0 : index
    %c0_18 = arith.constant 0 : index
    %36 = vector.load %arg6[%c0_16, %c0_17, %c0_18] : memref<2x8x32xbf16, #tpu.memory_space<vmem>>, vector<2x8x32xbf16>
    tpu.vector_store %arg6[%c0_16, %c0_17, %c0_18], %35 {strides = array<i32>} : memref<2x8x32xbf16, #tpu.memory_space<vmem>>, vector<2x8x32xbf16>,
    return
  }
  func.func @transform_0(%arg0: i32) -> (i32, i32, i32) {
    %c0_i32 = arith.constant 0 : i32
    %c0_i32_0 = arith.constant 0 : i32
    %c0_i32_1 = arith.constant 0 : i32
    return %arg0, %c0_i32, %c0_i32_0 : i32, i32, i32
  }
  func.func @transform_1(%arg0: i32) -> (i32, i32, i32) {
    %c0_i32 = arith.constant 0 : i32
    %c0_i32_0 = arith.constant 0 : i32
    %c0_i32_1 = arith.constant 0 : i32
    %c0_i32_2 = arith.constant 0 : i32
    return %c0_i32, %c0_i32_0, %c0_i32_1 : i32, i32, i32
  }
  func.func @transform_2(%arg0: i32) -> (i32, i32, i32) {
    %c0_i32 = arith.constant 0 : i32
    %c0_i32_0 = arith.constant 0 : i32
    %c0_i32_1 = arith.constant 0 : i32
    return %arg0, %c0_i32, %c0_i32_0 : i32, i32, i32
  }
  func.func @transform_3(%arg0: i32) -> (i32, i32) {
    %c0_i32 = arith.constant 0 : i32
    %c0_i32_0 = arith.constant 0 : i32
    %c0_i32_1 = arith.constant 0 : i32
    return %c0_i32, %c0_i32_0 : i32, i32
  }
  func.func @transform_4(%arg0: i32) -> (i32, i32) {
    %c0_i32 = arith.constant 0 : i32
    %c0_i32_0 = arith.constant 0 : i32
    %c0_i32_1 = arith.constant 0 : i32
    return %c0_i32, %c0_i32_0 : i32, i32
  }
  func.func @transform_5(%arg0: i32) -> (i32, i32, i32) {
    %c0_i32 = arith.constant 0 : i32
    %c0_i32_0 = arith.constant 0 : i32
    %c0_i32_1 = arith.constant 0 : i32
    return %arg0, %c0_i32, %c0_i32_0 : i32, i32, i32
  }
}

</mosaic_0001>

<bundles_post_ra>
// kernel: tpu_custom_call.1
= control target key start
LH: loop header
LB: loop body
LE: loop exit
PB: predicated region body
PF: predicated region fallthrough
CT: control target
= control target key end

     0   :  { %10 = vsyncpa [#allocation3], 0  ;;  %s316_s0 = inlined_call_operand.hbm [shape: bf16[2,8,32], index: 0, kind: input, shape index: {}]   ;;  %s317_s1 = inlined_call_operand.hbm [shape: bf16[1,8,32], index: 1, kind: input, shape index: {}]   ;;  %s318_s2 = inlined_call_operand.hbm [shape: bf16[2,8,32], index: 2, kind: input, shape index: {}]   ;;  %s319_s3 = inlined_call_operand.vmem [shape: f32[1,32], index: 3, kind: input, shape index: {}]   ;;  %s320_s4 = inlined_call_operand.vmem [shape: f32[1,32], index: 4, kind: input, shape index: {}]   ;;  %s321_s5 = inlined_call_operand.hbm [shape: bf16[2,8,32], index: 5, kind: output, shape index: {}]  }
   0x1   :  { %11 = vsyncpa [#allocation6], 0 }
   0x2   :  { %12 = vsyncpa [#allocation4], 0  ;;  %s249_s18 = smov [#allocation5]   ;;  %s250_s20 = smov [#allocation2]  }
   0x3   :  { %s31_s19 = sshll.u32 %s249_s18, 4  ;;  %s18_s21 = sshll.u32 %s250_s20, 4  ;;  %s32_s19 = int_to_ptr.vmem [resolvable:$true] %s31_s19  ;;  %s19_s21 = int_to_ptr.vmem [resolvable:$true] %s18_s21 }
   0x4   :  { %s171_s22 = scalar_lea.vmem %s32_s19, 64  ;;  %p176_p1 = scmp.lt.s32.totalorder %s32_s19, %s32_s19 }
   0x5   :  { %p172_p0 = scmp.ne.s32.totalorder %s32_s19, %s171_s22  ;;  %p177_p2 = scmp.lt.s32.totalorder %s171_s22, %s171_s22 }
   0x7   :  { %p178_p3 = por %p177_p2, %p176_p1 }
   0x9   :  { %p179_p4 = pnand %p178_p3, %p172_p0 }
   0xb   :  { %182 = shalt.err (!%p179_p4)
}
   0xc   :  { %34 = dma.hbm_to_vmem [thread:$0]  %s317_s1, 64, %s32_s19, [#allocation6]  }
   0xd   :  { %s191_s25 = scalar_lea.vmem %s19_s21, 128  ;;  %p196_p6 = scmp.lt.s32.totalorder %s19_s21, %s19_s21 }
   0xe   :  { %p192_p5 = scmp.ne.s32.totalorder %s19_s21, %s191_s25  ;;  %p197_p7 = scmp.lt.s32.totalorder %s191_s25, %s191_s25 }
  0x10   :  { %p198_p8 = por %p197_p7, %p196_p6 }
  0x12   :  { %p199_p9 = pnand %p198_p8, %p192_p5 }
  0x14   :  { %202 = shalt.err (!%p199_p9)
}
  0x15   :  { %s251_s26 = smov 64   ;;  %s252_s27 = smov 4  }
  0x16   :  { %24 = dma.hbm_to_vmem [thread:$0]  %s316_s0, 128, %s19_s21, [#allocation3], %s251_s26, %s251_s26, %s252_s27  }
  0x17   :  { %s253_s30 = smov [#allocation7]  }
  0x18   :  { %s40_s6 = sshll.u32 %s253_s30, 4  ;;  %s41_s6 = int_to_ptr.vmem [resolvable:$true] %s40_s6 }
  0x19   :  { %s211_s1 = scalar_lea.vmem %s41_s6, 128  ;;  %p216_p11 = scmp.lt.s32.totalorder %s41_s6, %s41_s6 }
  0x1a   :  { %p212_p10 = scmp.ne.s32.totalorder %s41_s6, %s211_s1  ;;  %p217_p12 = scmp.lt.s32.totalorder %s211_s1, %s211_s1 }
  0x1c   :  { %p218_p13 = por %p217_p12, %p216_p11 }
  0x1e   :  { %p219_p0 = pnand %p218_p13, %p212_p10 }
  0x20   :  { %222 = shalt.err (!%p219_p0)
}
  0x21   :  { %46 = dma.hbm_to_vmem [thread:$0]  %s318_s2, 128, %s41_s6, [#allocation6], %s251_s26, %s251_s26, %s252_s27  }
  0x22   :  { %243 = dma.done.wait [#allocation3], 128  }
  0x23   :  { %244 = vsyncadd [#allocation3], 4294967168 }
  0x24   :  { %245 = dma.done.wait [#allocation6], 192  }
  0x25   :  { %246 = vsyncadd [#allocation6], 4294967104  ;;  %v146_v0 = vld [vmem:[#allocation2] sm:$0xff]   ;;  %v64_v1 = vld [vmem:[#allocation5] sm:$0xf]  ;;  %vm76_vm0 = vcmask 261120  }
  0x26   :  { %v150_v2 = vld [vmem:[#allocation7] sm:$0xff]   ;;  %v147_v3 = vunpack.c.l.bf16 %v146_v0  ;;  %v65_v4 = vunpack.c.l.bf16 %v64_v1  ;;  %v148_v6 = vunpack.c.h.bf16 %v146_v0  ;;  %v143_v31 = vld [vmem:[%s319_s3] ss:$0 sm:$0xff]  ;;  %vm122_vm1 = vcmask 257024   ;;  %s254_s11 = smov [#allocation8]  }
  0x27   :  { %v151_v5 = vunpack.c.l.bf16 %v150_v2  ;;  %v152_v7 = vunpack.c.h.bf16 %v150_v2  ;;  %v144_v33 = vld [vmem:[%s320_s4] ss:$0 sm:$0xff]  ;;  %s130_s12 = sshll.u32 %s254_s11, 4  ;;  %s131_s12 = int_to_ptr.vmem [resolvable:$true] %s130_s12 }
  0x28   :  { %v66_v8 = vadd.f32 %v147_v3, %v65_v4  ;;  %v67_v9 = vadd.f32 %v148_v6, %v65_v4  ;;  %s223_s3 = scalar_lea.vmem %s131_s12, 128  ;;  %p228_p2 = scmp.lt.s32.totalorder %s131_s12, %s131_s12 }
  0x29   :  { %p224_p1 = scmp.ne.s32.totalorder %s131_s12, %s223_s3  ;;  %p229_p3 = scmp.lt.s32.totalorder %s223_s3, %s223_s3 }
  0x2a   :  { %v72_v10 = vadd.f32 %v151_v5, %v66_v8  ;;  %v73_v11 = vadd.f32 %v152_v7, %v67_v9 }
  0x2b   :  { %p230_p4 = por %p229_p3, %p228_p2 }
  0x2c   :  { %v77_v12 = vsel %vm76_vm0, %v72_v10, 0.0  ;;  %v80_v13 = vsel %vm76_vm0, %v73_v11, 0.0 }
  0x2d   :  { %78 = vadd.xlane.f32.xlu0 %v77_v12  ;;  %p231_p5 = pnand %p230_p4, %p224_p1 }
  0x31   :  { %81 = vadd.xlane.f32.xlu0 %v80_v13 }
  0xb6   :  { %v79_v14 = vpop.xlane.xlu0 %78 }
  0xb7   :  { %v84_v15 = vmul.f32 0.03125, %v79_v14 }
  0xb9   :  { %v86_v16 = vsub.f32 %v72_v10, %v84_v15 }
  0xba   :  { %v82_v17 = vpop.xlane.xlu0 %81 }
  0xbb   :  { %v85_v18 = vmul.f32 0.03125, %v82_v17  ;;  %v88_v19 = vmul.f32 %v86_v16, %v86_v16 }
  0xbd   :  { %v87_v20 = vsub.f32 %v73_v11, %v85_v18  ;;  %v90_v21 = vsel %vm76_vm0, %v88_v19, 0.0 }
  0xbe   :  { %91 = vadd.xlane.f32.xlu1 %v90_v21 }
  0xbf   :  { %v89_v22 = vmul.f32 %v87_v20, %v87_v20 }
  0xc1   :  { %v93_v23 = vsel %vm76_vm0, %v89_v22, 0.0 }
  0xc2   :  { %94 = vadd.xlane.f32.xlu1 %v93_v23 }
 0x147   :  { %v92_v24 = vpop.xlane.xlu1 %91 }
 0x148   :  { %v96_v25 = vmul.f32 0.03125, %v92_v24 }
 0x14a   :  { %v98_v26 = vadd.f32 1e-12, %v96_v25 }
 0x14b   :  { %v95_v27 = vpop.xlane.xlu1 %94 }
 0x14c   :  { %159 = vrsqrt.f32 %v98_v26  ;;  %v97_v28 = vmul.f32 0.03125, %v95_v27 }
 0x14e   :  { %v99_v29 = vadd.f32 1e-12, %v97_v28 }
 0x150   :  { %161 = vrsqrt.f32 %v99_v29 }
 0x159   :  { %v160_v30 = vpop.eup %159 }
 0x15a   :  { %v102_v32 = vmul.f32 %v160_v30, %v86_v16 }
 0x15c   :  { %v110_v34 = vmul.f32 %v143_v31, %v102_v32 }
 0x15d   :  { %v162_v35 = vpop.eup %161 }
 0x15e   :  { %v103_v36 = vmul.f32 %v162_v35, %v87_v20  ;;  %v118_v37 = vadd.f32 %v144_v33, %v110_v34 }
 0x160   :  { %v111_v38 = vmul.f32 %v143_v31, %v103_v36  ;;  %v120_v39 = vpack.c.bf16 %v118_v37, %v118_v37 }
 0x162   :  { %v119_v40 = vadd.f32 %v144_v33, %v111_v38  ;;  %123 = vst.msk [vmem:[#allocation8] sm:$0xf] %vm122_vm1, %v120_v39 }
 0x164   :  { %v121_v41 = vpack.c.bf16 %v119_v40, %v119_v40 }
 0x166   :  { %124 = vst.msk [vmem:[#allocation8 + $0x4] sm:$0xf] %vm122_vm1, %v121_v41 }
 0x167   :  { %234 = shalt.err (!%p231_p5)
}
 0x168   :  { %136 = dma.vmem_to_hbm [thread:$0]  %s131_s12, 128, %s321_s5, [#allocation4], %s251_s26, %s251_s26, %s252_s27  }
 0x169   :  { %247 = dma.done.wait [#allocation4], 128  }
 0x16a   :  { %248 = vsyncadd [#allocation4], 4294967168 }
 0x16b   :  { %140 = vsyncpa [#allocation3], 1 }
 0x16c   :  { %141 = vsyncpa [#allocation6], 1 }
 0x16d   :  { %142 = vsyncpa [#allocation4], 1 }

</bundles_post_ra>
